<compile_context>
chip_gen: v7x
topology: tpu7x:2x2x1
jax: 0.10.0
libtpu: 0.0.40
codegen_flags: <defaults>
</compile_context>

<pallas_src>
import jax
import jax.numpy as jnp
from jax.experimental import pallas as pl
from jax.experimental.pallas import tpu as pltpu
import numpy as np


def _pick_hw_tile(hw, cap=2048):
    """Largest multiple-of-128 divisor of hw that is <= cap (else the full hw)."""
    if hw <= cap:
        return hw
    t = (cap // 128) * 128
    while t >= 128:
        if hw % t == 0:
            return t
        t -= 128
    return hw


def _make_kernel(bb, t0, num_blocks, depthwise):
    """Kernel over one (bb, T0, C, hw_tile) input block -> (bb, T_final, C, hw_tile)."""

    def kernel(x_ref, w_ref, o_ref):
        # x_ref: (bb, T0, C, HWt)
        # w_ref: (NB, 3, C, 1)  [depthwise]   or   (NB, 3, C, C)  [groups=1]
        # o_ref: (bb, T_final, C, HWt)
        w_all = w_ref[...]                      # tiny; hoisted out of every loop
        for b in range(bb):
            cur = None                          # None => read planes from x_ref
            t_in = t0
            for i in range(num_blocks):
                if cur is None:
                    read = lambda ti, _b=b: x_ref[_b, ti, :, :]
                else:
                    read = lambda ti, _c=cur: _c[ti]
                t_out = (t_in - 1) // 3 + 1     # conv: k=3, stride=3, pad=1
                nxt = []
                for to in range(t_out):
                    acc = None
                    for k in range(3):
                        ti = 3 * to - 1 + k     # padded window start = 3*to - 1
                        if not (0 <= ti < t_in):
                            continue            # zero-padding tap: skip
                        p = read(ti)            # (C, HWt)
                        if depthwise:
                            term = p * w_all[i, k]               # (C,HWt)*(C,1)
                        else:
                            term = jnp.dot(w_all[i, k], p,        # (C,C)@(C,HWt)
                                           preferred_element_type=jnp.float32)
                        acc = term if acc is None else acc + term
                    nxt.append(jnp.maximum(acc, 0.0))             # ReLU
                cur, t_in = nxt, t_out
            if cur is None:                     # num_blocks == 0 (handled in wrapper)
                cur = [x_ref[b, t, :, :] for t in range(t_in)]
            for to in range(t_in):
                o_ref[b, to, :, :] = cur[to]

    return kernel


def reduce_temp_forward(x, block_weights, *, groups, bb=1, hw_tile_cap=2048):
    """Pallas forward of ReduceTempModule.

    x             : (B, C, T, H, W) float32
    block_weights : list (len = timepoints // 2) of conv weights, each
                    (C, 1, 3) if groups else (C, C, 3)  (torch weight[..., 0, 0])
    groups        : True -> groups=channels (depthwise), False -> groups=1
    """
    B, C, T0, H, W = x.shape
    HW = H * W
    num_blocks = len(block_weights)
    depthwise = bool(groups)

    if num_blocks == 0:                         # empty Sequential: just squeeze(dim=2)
        return x[:, :, 0] if T0 == 1 else x

    # Temporal extent after the conv chain.
    t_final = T0
    for _ in range(num_blocks):
        t_final = (t_final - 1) // 3 + 1

    # Weight packing: channels on sublanes so per-channel taps broadcast along lanes.
    if depthwise:
        w = jnp.stack([wi.reshape(C, 3) for wi in block_weights])       # (NB, C, 3)
        w = jnp.transpose(w, (0, 2, 1))[..., None]                      # (NB, 3, C, 1)
    else:
        w = jnp.stack([wi.reshape(C, C, 3) for wi in block_weights])    # (NB, C, C, 3)
        w = jnp.transpose(w, (0, 3, 1, 2))                              # (NB, 3, C, C)
    w = w.astype(jnp.float32)

    # Sublane/lane dense layout: (B, T, C, H*W)  ->  per-time planes are (C, HW).
    x_k = x.reshape(B, C, T0, HW).transpose(0, 2, 1, 3).astype(jnp.float32)

    assert B % bb == 0, "batch block must divide B"
    hw_tile = _pick_hw_tile(HW, hw_tile_cap)

    kernel = _make_kernel(bb, T0, num_blocks, depthwise)
    out = pl.pallas_call(
        kernel,
        out_shape=jax.ShapeDtypeStruct((B, t_final, C, HW), jnp.float32),
        grid=(B // bb, HW // hw_tile),
        in_specs=[
            pl.BlockSpec((bb, T0, C, hw_tile), lambda b, j: (b, 0, 0, j)),
            pl.BlockSpec(w.shape, lambda b, j: (0, 0, 0, 0)),
        ],
        out_specs=pl.BlockSpec((bb, t_final, C, hw_tile), lambda b, j: (b, 0, 0, j)),
        compiler_params=pltpu.CompilerParams(
            dimension_semantics=("parallel", "parallel")),
    )(x_k, w)

    out = out.transpose(0, 2, 1, 3).reshape(B, C, t_final, H, W)
    if t_final == 1:
        out = out[:, :, 0]                      # == torch squeeze(dim=2)
    return out


def reference(x, block_weights, *, groups):
    """Pure-JAX reference mirroring the PyTorch forward."""
    C = x.shape[1]
    y = x
    for wi in block_weights:
        w5 = wi.reshape(C, -1, 3)[:, :, :, None, None]   # (C, Cin_g, 3, 1, 1)
        y = jax.lax.conv_general_dilated(
            y, w5,
            window_strides=(3, 1, 1),
            padding=((1, 1), (0, 0), (0, 0)),
            dimension_numbers=("NCDHW", "OIDHW", "NCDHW"),
            feature_group_count=C if groups else 1)
        y = jnp.maximum(y, 0.0)
    if y.shape[2] == 1:
        y = y[:, :, 0]
    return y


if __name__ == "__main__":
    # Full f32 matmul/conv precision so the MXU path matches the XLA reference tightly.
    jax.config.update("jax_default_matmul_precision", "highest")

    # ReduceTempModule(channels=16, timepoints=4, att_kernel=3, groups=True/False)
    # (att_kernel only populates unused kernel_size/padding_size attributes.)
    B, C, H, W = 2, 16, 16, 16
    timepoints = 4
    num_blocks = timepoints // 2                # 2 conv+ReLU blocks: T 4 -> 2 -> 1

    key = jax.random.PRNGKey(0)
    keys = jax.random.split(key, 1 + 2 * num_blocks)
    x = jax.random.normal(keys[0], (B, C, timepoints, H, W), jnp.float32)

    # Synthetic torch-shaped conv weights (trailing (1,1) spatial taps dropped).
    w_dw = [0.4 * jax.random.normal(keys[1 + i], (C, 1, 3), jnp.float32)
            for i in range(num_blocks)]                          # groups = channels
    w_fc = [0.2 * jax.random.normal(keys[1 + num_blocks + i], (C, C, 3), jnp.float32)
            for i in range(num_blocks)]                          # groups = 1

    # groups=True (depthwise) variant.
    out_dw = jax.block_until_ready(reduce_temp_forward(x, w_dw, groups=True))
    ref_dw = jax.block_until_ready(reference(x, w_dw, groups=True))
    assert out_dw.shape == (B, C, H, W), out_dw.shape
    np.testing.assert_allclose(np.asarray(out_dw), np.asarray(ref_dw),
                               rtol=1e-4, atol=1e-4)

    # groups=False (full channel mixing) variant.
    out_fc = jax.block_until_ready(reduce_temp_forward(x, w_fc, groups=False))
    ref_fc = jax.block_until_ready(reference(x, w_fc, groups=False))
    assert out_fc.shape == (B, C, H, W), out_fc.shape
    np.testing.assert_allclose(np.asarray(out_fc), np.asarray(ref_fc),
                               rtol=1e-3, atol=1e-3)

    print("KERNEL_OK")
</pallas_src>

<mosaic_0001>
module attributes {stable_mosaic.version = 11 : i64} {
  func.func @kernel(%arg0: i32, %arg1: i32, %arg2: memref<1x4x16x256xf32, #tpu.memory_space<vmem>>, %arg3: memref<2x3x16x1xf32, #tpu.memory_space<vmem>>, %arg4: memref<1x1x16x256xf32, #tpu.memory_space<vmem>>) attributes {dimension_semantics = [#tpu.dimension_semantics<parallel>, #tpu.dimension_semantics<parallel>], iteration_bounds = array<i64: 2, 1>, scalar_prefetch = 0 : i64, scratch_operands = 0 : i64, tpu.core_type = #tpu.core_type<tc>, window_params = [{transform_indices = @transform_0, window_bounds = array<i64: 1, 4, 16, 256>}, {pipeline_mode = #tpu.pipeline_mode<synchronous>, transform_indices = @transform_1, window_bounds = array<i64: 2, 3, 16, 1>}, {transform_indices = @transform_2, window_bounds = array<i64: 1, 1, 16, 256>}]} {
    %c0 = arith.constant 0 : index
    %c0_0 = arith.constant 0 : index
    %c0_1 = arith.constant 0 : index
    %c0_2 = arith.constant 0 : index
    %0 = vector.load %arg3[%c0, %c0_0, %c0_1, %c0_2] : memref<2x3x16x1xf32, #tpu.memory_space<vmem>>, vector<2x3x16x1xf32>
    %c0_3 = arith.constant 0 : index
    %c0_4 = arith.constant 0 : index
    %c0_5 = arith.constant 0 : index
    %c0_6 = arith.constant 0 : index
    %1 = vector.load %arg2[%c0_3, %c0_4, %c0_5, %c0_6] : memref<1x4x16x256xf32, #tpu.memory_space<vmem>>, vector<1x1x16x256xf32>
    %2 = vector.shape_cast %1 : vector<1x1x16x256xf32> to vector<16x256xf32>
    %3 = vector.extract_strided_slice %0 {offsets = [0, 1, 0, 0], sizes = [1, 1, 16, 1], strides = [1, 1, 1, 1]} : vector<2x3x16x1xf32> to vector<1x1x16x1xf32>
    %4 = vector.shape_cast %3 : vector<1x1x16x1xf32> to vector<16x1xf32>
    %5 = vector.broadcast %4 : vector<16x1xf32> to vector<16x256xf32>
    %6 = arith.mulf %2, %5 : vector<16x256xf32>
    %c0_7 = arith.constant 0 : index
    %c1 = arith.constant 1 : index
    %c0_8 = arith.constant 0 : index
    %c0_9 = arith.constant 0 : index
    %7 = vector.load %arg2[%c0_7, %c1, %c0_8, %c0_9] : memref<1x4x16x256xf32, #tpu.memory_space<vmem>>, vector<1x1x16x256xf32>
    %8 = vector.shape_cast %7 : vector<1x1x16x256xf32> to vector<16x256xf32>
    %9 = vector.extract_strided_slice %0 {offsets = [0, 2, 0, 0], sizes = [1, 1, 16, 1], strides = [1, 1, 1, 1]} : vector<2x3x16x1xf32> to vector<1x1x16x1xf32>
    %10 = vector.shape_cast %9 : vector<1x1x16x1xf32> to vector<16x1xf32>
    %11 = vector.broadcast %10 : vector<16x1xf32> to vector<16x256xf32>
    %12 = arith.mulf %8, %11 : vector<16x256xf32>
    %13 = arith.addf %6, %12 : vector<16x256xf32>
    %cst = arith.constant 0.000000e+00 : f32
    %14 = vector.broadcast %cst : f32 to vector<16x256xf32>
    %15 = arith.maximumf %13, %14 : vector<16x256xf32>
    %c0_10 = arith.constant 0 : index
    %c2 = arith.constant 2 : index
    %c0_11 = arith.constant 0 : index
    %c0_12 = arith.constant 0 : index
    %16 = vector.load %arg2[%c0_10, %c2, %c0_11, %c0_12] : memref<1x4x16x256xf32, #tpu.memory_space<vmem>>, vector<1x1x16x256xf32>
    %17 = vector.shape_cast %16 : vector<1x1x16x256xf32> to vector<16x256xf32>
    %18 = vector.extract_strided_slice %0 {offsets = [0, 0, 0, 0], sizes = [1, 1, 16, 1], strides = [1, 1, 1, 1]} : vector<2x3x16x1xf32> to vector<1x1x16x1xf32>
    %19 = vector.shape_cast %18 : vector<1x1x16x1xf32> to vector<16x1xf32>
    %20 = vector.broadcast %19 : vector<16x1xf32> to vector<16x256xf32>
    %21 = arith.mulf %17, %20 : vector<16x256xf32>
    %c0_13 = arith.constant 0 : index
    %c3 = arith.constant 3 : index
    %c0_14 = arith.constant 0 : index
    %c0_15 = arith.constant 0 : index
    %22 = vector.load %arg2[%c0_13, %c3, %c0_14, %c0_15] : memref<1x4x16x256xf32, #tpu.memory_space<vmem>>, vector<1x1x16x256xf32>
    %23 = vector.shape_cast %22 : vector<1x1x16x256xf32> to vector<16x256xf32>
    %24 = vector.extract_strided_slice %0 {offsets = [0, 1, 0, 0], sizes = [1, 1, 16, 1], strides = [1, 1, 1, 1]} : vector<2x3x16x1xf32> to vector<1x1x16x1xf32>
    %25 = vector.shape_cast %24 : vector<1x1x16x1xf32> to vector<16x1xf32>
    %26 = vector.broadcast %25 : vector<16x1xf32> to vector<16x256xf32>
    %27 = arith.mulf %23, %26 : vector<16x256xf32>
    %28 = arith.addf %21, %27 : vector<16x256xf32>
    %cst_16 = arith.constant 0.000000e+00 : f32
    %29 = vector.broadcast %cst_16 : f32 to vector<16x256xf32>
    %30 = arith.maximumf %28, %29 : vector<16x256xf32>
    %31 = vector.extract_strided_slice %0 {offsets = [1, 1, 0, 0], sizes = [1, 1, 16, 1], strides = [1, 1, 1, 1]} : vector<2x3x16x1xf32> to vector<1x1x16x1xf32>
    %32 = vector.shape_cast %31 : vector<1x1x16x1xf32> to vector<16x1xf32>
    %33 = vector.broadcast %32 : vector<16x1xf32> to vector<16x256xf32>
    %34 = arith.mulf %15, %33 : vector<16x256xf32>
    %35 = vector.extract_strided_slice %0 {offsets = [1, 2, 0, 0], sizes = [1, 1, 16, 1], strides = [1, 1, 1, 1]} : vector<2x3x16x1xf32> to vector<1x1x16x1xf32>
    %36 = vector.shape_cast %35 : vector<1x1x16x1xf32> to vector<16x1xf32>
    %37 = vector.broadcast %36 : vector<16x1xf32> to vector<16x256xf32>
    %38 = arith.mulf %30, %37 : vector<16x256xf32>
    %39 = arith.addf %34, %38 : vector<16x256xf32>
    %cst_17 = arith.constant 0.000000e+00 : f32
    %40 = vector.broadcast %cst_17 : f32 to vector<16x256xf32>
    %41 = arith.maximumf %39, %40 : vector<16x256xf32>
    %c0_18 = arith.constant 0 : index
    %c0_19 = arith.constant 0 : index
    %c0_20 = arith.constant 0 : index
    %c0_21 = arith.constant 0 : index
    %42 = vector.load %arg4[%c0_18, %c0_19, %c0_20, %c0_21] : memref<1x1x16x256xf32, #tpu.memory_space<vmem>>, vector<1x1x16x256xf32>
    %43 = vector.shape_cast %42 : vector<1x1x16x256xf32> to vector<16x256xf32>
    %44 = vector.shape_cast %41 : vector<16x256xf32> to vector<1x1x16x256xf32>
    tpu.vector_store %arg4[%c0_18, %c0_19, %c0_20, %c0_21], %44 {strides = array<i32>} : memref<1x1x16x256xf32, #tpu.memory_space<vmem>>, vector<1x1x16x256xf32>,
    return
  }
  func.func @transform_0(%arg0: i32, %arg1: i32) -> (i32, i32, i32, i32) {
    %c0_i32 = arith.constant 0 : i32
    %c0_i32_0 = arith.constant 0 : i32
    %c0_i32_1 = arith.constant 0 : i32
    return %arg0, %c0_i32, %c0_i32_0, %arg1 : i32, i32, i32, i32
  }
  func.func @transform_1(%arg0: i32, %arg1: i32) -> (i32, i32, i32, i32) {
    %c0_i32 = arith.constant 0 : i32
    %c0_i32_0 = arith.constant 0 : i32
    %c0_i32_1 = arith.constant 0 : i32
    %c0_i32_2 = arith.constant 0 : i32
    %c0_i32_3 = arith.constant 0 : i32
    return %c0_i32, %c0_i32_0, %c0_i32_1, %c0_i32_2 : i32, i32, i32, i32
  }
  func.func @transform_2(%arg0: i32, %arg1: i32) -> (i32, i32, i32, i32) {
    %c0_i32 = arith.constant 0 : i32
    %c0_i32_0 = arith.constant 0 : i32
    %c0_i32_1 = arith.constant 0 : i32
    return %arg0, %c0_i32, %c0_i32_0, %arg1 : i32, i32, i32, i32
  }
}

</mosaic_0001>

<bundles_post_ra>
// kernel: tpu_custom_call.1
= control target key start
LH: loop header
LB: loop body
LE: loop exit
PB: predicated region body
PF: predicated region fallthrough
CT: control target
= control target key end

     0   :  { %7 = vsyncpa [#allocation3], 0  ;;  %s874_s0 = inlined_call_operand.hbm [shape: f32[2,4,16,256], index: 0, kind: input, shape index: {}]   ;;  %s875_s1 = inlined_call_operand.vmem [shape: f32[2,3,16,1], index: 1, kind: input, shape index: {}]   ;;  %s876_s2 = inlined_call_operand.hbm [shape: f32[2,1,16,256], index: 2, kind: output, shape index: {}]  }
   0x1   :  { %9 = vsyncpa [#allocation3 + $0x1], 0 }
   0x2   :  { %10 = vsyncpa [#allocation4], 0 }
   0x3   :  { %12 = vsyncpa [#allocation4 + $0x1], 0  ;;  %s650_s9 = smov 0   ;;  %s652_s10 = smov 0  }
   0x4   :  { %s654_s11 = smov 0   ;;  %s656_s12 = smov 0  }
   0x5   :  { %s658_s13 = smov 0   ;;  %s660_s14 = smov 0  }
   0x6 LB: > { %s416_s15 = sadd.s32 4294967295, %s626_s14   ;;  %s417_s16 = sadd.s32 4294967294, %s626_s14   ;;  %s626_s14 = sphi %s660_s14, %s18_s14   ;;  %s622_s13 = sphi %s658_s13, %s891_s13   ;;  %s618_s12 = sphi %s656_s12, %s890_s12   ;;  %s614_s11 = sphi %s654_s11, %s889_s11   ;;  %s610_s10 = sphi %s652_s10, %s888_s10   ;;  %s606_s9 = sphi %s650_s9, %s887_s9  }
   0x7   : > { %s30_s17 = sadd.s32 1, %s622_s13  ;;  %s39_s18 = sadd.s32 1, %s614_s11 }
   0x8   : > { %p32_p0 = scmp.ge.s32.totalorder %s30_s17, 2  ;;  %p46_p1 = scmp.ne.s32.totalorder %s614_s11, %s610_s10 }
   0x9   : > { %p47_p2 = scmp.eq.s32.totalorder %s626_s14, 0  ;;  %p52_p3 = scmp.ne.s32.totalorder %s610_s10, %s606_s9 }
   0xa   : > { %s893_s17 = smov (%p32_p0, %s30_s17), 0  ;;  %p53_p5 = scmp.eq.s32.totalorder %s416_s15, 0 }
   0xb   : > { %p691_p4 = por %p47_p2, %p46_p1  ;;  %s34_s20 = ssub.s32 %s622_s13, %s893_s17 }
   0xc   : > { %p99_p6 = scmp.eq.s32.totalorder %s416_s15, 1  ;;  %p37_p7 = scmp.eq.s32.totalorder %s34_s20, 0 }
   0xd   : > { %p697_p8 = por %p53_p5, %p52_p3  ;;  %p105_p10 = scmp.eq.s32.totalorder %s417_s16, 1 }
   0xe   : > { %p701_p9 = por %p99_p6, %p46_p1  ;;  %p457_p13 = scmp.lt.s32.totalorder %s626_s14, 2 }
   0xf   : > { %s706_s23 = scalar_select %p37_p7, %s614_s11, %s39_s18  }
  0x10   : > { %s880_s22 = scalar_select %p701_p9, 1, 0 }
  0x11   : > { %p708_p11 = por %p105_p10, %p52_p3  ;;  %s128_s25 = sand.u32 1, %s614_s11  }
  0x12   : > { %s420_s26 = sshll.u32 %s128_s25, 7  ;;  %s443_s27 = sshll.u32 %s622_s13, 11 }
  0x13   : > { %s881_s24 = scalar_select %p708_p11, 1, 0 }
  0x14   : > { %s719_s30 = scalar_lea.hbm %s874_s0, %s443_s27  ;;  %s132_s3 = scalar_lea.vmem [#allocation2], %s420_s26 }
  0x15   : > { %s141_s4 = sshll.u32 %s132_s3, 4  ;;  %p725_p0 = pnand %p457_p13, %p691_p4  ;;  %s721_s4 = int_to_ptr.vmem [resolvable:$true] %s141_s4 }
  0x16   : > { %s730_s6 = scalar_lea.sflag [#allocation3], %s128_s25  ;;  %s514_s7 = scalar_lea.hbm %s719_s30, 2048 }
  0x17   : > { %p515_p2 = scmp.ne.s32.totalorder %s719_s30, %s514_s7  ;;  %p516_p3 = pneg %p725_p0 }
  0x18   : > { %s519_s16 = scalar_lea.hbm %s874_s0, 4096  ;;  %p520_p4 = scmp.lt.u32.totalorder %s719_s30, %s874_s0 }
  0x19   : > { %p517_p5 = pnand %p516_p3, %p515_p2  ;;  %p521_p7 = scmp.lt.u32.totalorder %s519_s16, %s514_s7 }
  0x1a   : > { %p523_p13 = scmp.lt.u32.totalorder %s514_s7, %s719_s30 }
  0x1b   : > { %p518_p6 = pneg %p517_p5  ;;  %p522_p10 = por %p521_p7, %p520_p4 }
  0x1d   : > { %p524_p12 = por %p523_p13, %p522_p10 }
  0x1f   : > { %p525_p1 = pnand %p524_p12, %p518_p6 }
  0x21   : > { %528 = shalt.err (!%p525_p1)
}
  0x22   : > { %s529_s20 = scalar_lea.vmem %s721_s4, 2048  ;;  %s628_s25 = smov [#allocation2]  }
  0x23   : > { %p530_p2 = scmp.ne.s32.totalorder %s721_s4, %s529_s20  ;;  %s534_s26 = sshll.u32 %s628_s25, 4  ;;  %s535_s26 = int_to_ptr.vmem [resolvable:$false] %s534_s26 }
  0x24   : > { %s536_s27 = scalar_lea.vmem %s535_s26, 4096  ;;  %p537_p9 = scmp.lt.s32.totalorder %s721_s4, %s535_s26 }
  0x25   : > { %p532_p5 = pnand %p530_p2, %p516_p3  ;;  %p538_p4 = scmp.lt.s32.totalorder %s536_s27, %s529_s20 }
  0x27   : > { %p533_p11 = pneg %p532_p5  ;;  %p539_p7 = por %p538_p4, %p537_p9 }
  0x29   : > { %p540_p10 = pnand %p539_p7, %p533_p11 }
  0x2b   : > { %543 = shalt.err (!%p540_p10)
}
  0x2c   : > { %s629_s28 = smov 256   ;;  %s630_s29 = smov 16  }
  0x2d   : > { %452 = dma.hbm_to_vmem [thread:$0]  (!%p725_p0), %s719_s30, 2048, %s721_s4, %s730_s6, %s629_s28, %s629_s28, %s630_s29  }
  0x2e   : > { %p149_p12 = scmp.lt.s32.totalorder %s626_s14, 3  ;;  %p883_p1 = scmp.ge.s32.totalorder %s626_s14, 1 }
  0x30   : > { %p150_p3 = pnand %p883_p1, %p149_p12 }
  0x31   : > { %s762_s3 = sand.u32 (!%p150_p3), 1, %s610_s10  }
  0x32   : > { %153 = sbr.rel (%p150_p3) target bundleno = 226 (0xe2), region = 28  ;;  %s424_s7 = sshll.u32 (!%p150_p3), %s762_s3, 7 }
  0x33   : > { %s156_s8 = scalar_lea.sflag (!%p150_p3), [#allocation3], %s762_s3  ;;  %s766_s15 = scalar_lea.vmem (!%p150_p3), [#allocation2], %s424_s7 }
  0x39   : > { %597 = dma.done.wait (%p697_p8), %s156_s8, 2048  }
  0x3a   : > { %599 = vsyncadd (%p697_p8), %s156_s8, 4294965248  ;;  %v631_v0 = vmov 0   ;;  %v186_v1 = vld [vmem:[%s875_s1 + $0x20] sm:$0xff]  ;;  %v184_v2 = vld [vmem:[%s875_s1 + $0x10] sm:$0xff]  ;;  %s425_s16 = sshll.u32 %s762_s3, 5  ;;  %s444_s19 = sshll.u32 %s618_s12, 9 }
  0x3b   : > { %513 = vset.pattern.permute.xlu1 %v631_v0  ;;  %512 = vset.pattern.permute.xlu0 %v631_v0  ;;  %v187_v3 = vld [vmem:[%s875_s1 + $0x28] sm:$0xff]  ;;  %v185_v4 = vld [vmem:[%s875_s1 + $0x18] sm:$0xff]  ;;  %v182_v6 = vld [vmem:[%s875_s1] sm:$0xff]  ;;  %s825_s25 = scalar_lea.hbm %s876_s2, %s444_s19  ;;  %s314_s12 = scalar_lea.sflag [#allocation4], %s762_s3 }
  0x3c   : > { %217 = vperm.xlu1 %513, %v186_v1   ;;  %198 = vperm.xlu0 %512, %v184_v2   ;;  %v183_v5 = vld [vmem:[%s875_s1 + $0x8] sm:$0xff]  ;;  %v188_v8 = vld [vmem:[%s875_s1 + $0x40] sm:$0xff]  ;;  %v191_v9 = vld [vmem:[%s875_s1 + $0x58] sm:$0xff]  ;;  %p884_p9 = scmp.ne.s32.totalorder %s880_s22, 0  ;;  %s632_s27 = smov [#allocation5]  }
  0x3d   : > { %v189_v7 = vld [vmem:[%s875_s1 + $0x48] sm:$0xff]  ;;  %v190_v10 = vld [vmem:[%s875_s1 + $0x50] sm:$0xff]  ;;  %v426_v13 = vld [vmem:[%s766_s15 + $0x20] sm:$0xff]  ;;  %s548_s28 = sshll.u32 %s632_s27, 4  ;;  %s549_s28 = int_to_ptr.vmem [resolvable:$false] %s548_s28 }
  0x3e   : > { %v427_v14 = vld [vmem:[%s766_s15 + $0x28] sm:$0xff]  ;;  %v192_v15 = vld [vmem:[%s766_s15] sm:$0xff]  ;;  %v428_v17 = vld [vmem:[%s766_s15 + $0x30] sm:$0xff]  ;;  %s550_s29 = scalar_lea.vmem %s549_s28, 1024 }
  0x3f   : > { %v193_v16 = vld [vmem:[%s766_s15 + $0x8] sm:$0xff]  ;;  %v429_v18 = vld [vmem:[%s766_s15 + $0x38] sm:$0xff]  ;;  %v194_v19 = vld [vmem:[%s766_s15 + $0x10] sm:$0xff] }
  0x40   : > { %222 = vperm.xlu1 %513, %v187_v3   ;;  %203 = vperm.xlu0 %512, %v185_v4   ;;  %v195_v20 = vld [vmem:[%s766_s15 + $0x18] sm:$0xff]  ;;  %v432_v23 = vld [vmem:[%s766_s15 + $0x50] sm:$0xff]  ;;  %v434_v30 = vld [vmem:[%s766_s15 + $0x60] sm:$0xff] }
  0x41   : > { %v436_v24 = vld [vmem:[%s766_s15 + $0x70] sm:$0xff]  ;;  %v437_v29 = vld [vmem:[%s766_s15 + $0x78] sm:$0xff]  ;;  %v435_v31 = vld [vmem:[%s766_s15 + $0x68] sm:$0xff] }
  0x42   : > { %v433_v36 = vld [vmem:[%s766_s15 + $0x58] sm:$0xff]  ;;  %v430_v37 = vld [vmem:[%s766_s15 + $0x40] sm:$0xff]  ;;  %v431_v38 = vld [vmem:[%s766_s15 + $0x48] sm:$0xff]  ;;  %s179_s15 = scalar_lea.vmem [#allocation5], %s425_s16 }
  0x43   : > { %s329_s18 = sshll.u32 %s179_s15, 4  ;;  %s820_s18 = int_to_ptr.vmem [resolvable:$true] %s329_s18 }
  0x44   : > { %249 = vperm.xlu1 %513, %v183_v5   ;;  %244 = vperm.xlu0 %512, %v182_v6   ;;  %s544_s26 = scalar_lea.vmem %s820_s18, 512  ;;  %p551_p6 = scmp.lt.s32.totalorder %s820_s18, %s549_s28 }
  0x45   : > { %p545_p8 = scmp.ne.s32.totalorder %s820_s18, %s544_s26  ;;  %p552_p13 = scmp.lt.s32.totalorder %s550_s29, %s544_s26 }
  0x47   : > { %p546_p11 = pnand %p545_p8, %p884_p9  ;;  %p553_p2 = por %p552_p13, %p551_p6 }
  0x48   : > { %280 = vperm.xlu1 %513, %v189_v7   ;;  %275 = vperm.xlu0 %512, %v188_v8  }
  0x49   : > { %p547_p0 = pneg %p546_p11 }
  0x4b   : > { %p554_p5 = pnand %p553_p2, %p547_p0 }
  0x4c   : > { %294 = vperm.xlu1 %513, %v191_v9   ;;  %289 = vperm.xlu0 %512, %v190_v10  }
  0xbb   : > { %v218_v11 = vpop.permute.xlu1 %217  ;;  %v199_v12 = vpop.permute.xlu0 %198 }
  0xbc   : > { %v225_v25 = vmul.f32 %v426_v13, %v218_v11  ;;  %v226_v26 = vmul.f32 %v427_v14, %v218_v11  ;;  %v206_v27 = vmul.f32 %v199_v12, %v192_v15  ;;  %v207_v28 = vmul.f32 %v199_v12, %v193_v16 }
  0xbd   : > { %v261_v43 = vmul.f32 %v434_v30, %v199_v12  ;;  %v262_v44 = vmul.f32 %v435_v31, %v199_v12 }
  0xbe   : > { %v229_v51 = vadd.f32 %v225_v25, %v206_v27  ;;  %v230_v52 = vadd.f32 %v226_v26, %v207_v28 }
  0xbf   : > { %v223_v21 = vpop.permute.xlu1 %222  ;;  %v204_v22 = vpop.permute.xlu0 %203 }
  0xc0   : > { %v227_v32 = vmul.f32 %v428_v17, %v223_v21  ;;  %v228_v33 = vmul.f32 %v429_v18, %v223_v21  ;;  %v208_v34 = vmul.f32 %v204_v22, %v194_v19  ;;  %v209_v35 = vmul.f32 %v204_v22, %v195_v20 }
  0xc1   : > { %v263_v41 = vmul.f32 %v436_v24, %v204_v22  ;;  %v264_v42 = vmul.f32 %v437_v29, %v204_v22  ;;  %v233_v61 = vmax.f32 %v229_v51, 0.0  ;;  %v234_v62 = vmax.f32 %v230_v52, 0.0 }
  0xc2   : > { %v231_v49 = vadd.f32 %v227_v32, %v208_v34  ;;  %v232_v50 = vadd.f32 %v228_v33, %v209_v35 }
  0xc3   : > { %v250_v39 = vpop.permute.xlu1 %249  ;;  %v245_v40 = vpop.permute.xlu0 %244 }
  0xc4   : > { %v254_v45 = vmul.f32 %v432_v23, %v250_v39  ;;  %v255_v46 = vmul.f32 %v433_v36, %v250_v39  ;;  %v252_v47 = vmul.f32 %v430_v37, %v245_v40  ;;  %v253_v48 = vmul.f32 %v431_v38, %v245_v40 }
  0xc5   : > { %v235_v59 = vmax.f32 %v231_v49, 0.0  ;;  %v236_v60 = vmax.f32 %v232_v50, 0.0 }
  0xc6   : > { %v267_v53 = vadd.f32 %v263_v41, %v254_v45  ;;  %v268_v54 = vadd.f32 %v264_v42, %v255_v46  ;;  %v265_v55 = vadd.f32 %v261_v43, %v252_v47  ;;  %v266_v56 = vadd.f32 %v262_v44, %v253_v48 }
  0xc7   : > { %v281_v57 = vpop.permute.xlu1 %280  ;;  %v276_v58 = vpop.permute.xlu0 %275 }
  0xc8   : > { %v271_v63 = vmax.f32 %v267_v53, 0.0  ;;  %v272_v0 = vmax.f32 %v268_v54, 0.0  ;;  %v269_v1 = vmax.f32 %v265_v55, 0.0  ;;  %v270_v2 = vmax.f32 %v266_v56, 0.0 }
  0xc9   : > { %v285_v3 = vmul.f32 %v281_v57, %v235_v59  ;;  %v286_v4 = vmul.f32 %v281_v57, %v236_v60  ;;  %v283_v5 = vmul.f32 %v276_v58, %v233_v61  ;;  %v284_v6 = vmul.f32 %v276_v58, %v234_v62 }
  0xcb   : > { %v295_v7 = vpop.permute.xlu1 %294  ;;  %v290_v8 = vpop.permute.xlu0 %289 }
  0xcc   : > { %v299_v9 = vmul.f32 %v295_v7, %v271_v63  ;;  %v300_v10 = vmul.f32 %v295_v7, %v272_v0  ;;  %v297_v11 = vmul.f32 %v290_v8, %v269_v1  ;;  %v298_v12 = vmul.f32 %v290_v8, %v270_v2 }
  0xce   : > { %v303_v13 = vadd.f32 %v299_v9, %v285_v3  ;;  %v304_v14 = vadd.f32 %v300_v10, %v286_v4  ;;  %v301_v15 = vadd.f32 %v297_v11, %v283_v5  ;;  %v302_v16 = vadd.f32 %v298_v12, %v284_v6 }
  0xd0   : > { %v307_v17 = vmax.f32 %v303_v13, 0.0  ;;  %v308_v18 = vmax.f32 %v304_v14, 0.0  ;;  %v305_v19 = vmax.f32 %v301_v15, 0.0  ;;  %v306_v20 = vmax.f32 %v302_v16, 0.0 }
  0xd2   : > { %311 = vst [vmem:[%s179_s15 + $0x10] sm:$0xff] %v307_v17  ;;  %312 = vst [vmem:[%s179_s15 + $0x18] sm:$0xff] %v308_v18 }
  0xd3   : > { %309 = vst [vmem:[%s179_s15] sm:$0xff] %v305_v19  ;;  %310 = vst [vmem:[%s179_s15 + $0x8] sm:$0xff] %v306_v20 }
  0xd4   : > { %557 = shalt.err (!%p554_p5)
}
  0xd5   : > { %s558_s7 = scalar_lea.hbm %s825_s25, 512  ;;  %s562_s4 = scalar_lea.hbm %s876_s2, 1024 }
  0xd6   : > { %p559_p4 = scmp.ne.s32.totalorder %s825_s25, %s558_s7  ;;  %p563_p12 = scmp.lt.u32.totalorder %s825_s25, %s876_s2 }
  0xd7   : > { %p564_p1 = scmp.lt.u32.totalorder %s562_s4, %s558_s7  ;;  %p566_p8 = scmp.lt.u32.totalorder %s558_s7, %s825_s25 }
  0xd8   : > { %p560_p7 = pnand %p559_p4, %p884_p9 }
  0xd9   : > { %p565_p3 = por %p564_p1, %p563_p12 }
  0xda   : > { %p561_p10 = pneg %p560_p7 }
  0xdb   : > { %p567_p11 = por %p566_p8, %p565_p3 }
  0xdd   : > { %p568_p0 = pnand %p567_p11, %p561_p10 }
  0xdf   : > { %571 = shalt.err (!%p568_p0)
}
  0xe0   : > { %s633_s16 = smov 256   ;;  %s634_s15 = smov 16  }
  0xe1   : > { %447 = dma.vmem_to_hbm [thread:$0]  (%p884_p9), %s820_s18, 512, %s825_s25, %s314_s12, %s633_s16, %s633_s16, %s634_s15  }
  0xe2 PF: > { %s344_s19 = sand.u32 1, %s606_s9   ;;  %p885_p6 = scmp.ne.s32.totalorder %s881_s24, 0 }
  0xe3   : > { %p886_p13 = scmp.ge.s32.totalorder %s626_s14, 2  ;;  %s345_s21 = scalar_lea.sflag [#allocation4], %s344_s19 }
  0xe5   : > { %p454_p2 = pnand %p886_p13, %p885_p6 }
  0xe7   : > { %601 = dma.done.wait (!%p454_p2), %s345_s21, 512  }
  0xe8   : > { %603 = vsyncadd (!%p454_p2), %s345_s21, 4294966784  ;;  %s18_s14 = sadd.s32 1, %s626_s14   ;;  %s887_s9 = smov %s610_s10 }
  0xe9   : > { %p15_p5 = scmp.ge.s32.totalorder %s18_s14, 4   ;;  %s888_s10 = smov %s614_s11 }
  0xea   : > { %s889_s11 = smov %s706_s23  ;;  %s890_s12 = smov %s622_s13 }
  0xeb   : > { %s891_s13 = smov %s893_s17  ;;  %17 = sbr.rel (!%p15_p5) target bundleno = 6 (0x6), region = 76 }
  0xf2   :  { %350 = vsyncpa [#allocation3], 1 }
  0xf3   :  { %352 = vsyncpa [#allocation3 + $0x1], 1 }
  0xf4   :  { %353 = vsyncpa [#allocation4], 1 }
  0xf5   :  { %355 = vsyncpa [#allocation4 + $0x1], 1 }

</bundles_post_ra>
